<compile_context>
chip_gen: v7x
topology: tpu7x:2x2x1
jax: 0.10.0
libtpu: 0.0.40
codegen_flags: <defaults>
</compile_context>

<pallas_src>
import jax
import jax.numpy as jnp
from jax.experimental import pallas as pl
from jax.experimental.pallas import tpu as pltpu


# ----------------------------- config --------------------------------------

_VMEM_SOFT_BUDGET = 40 * 1024 * 1024   # conservative working-set cap (v5e/v6e/v7x)
_VMEM_LIMIT_BYTES = 48 * 1024 * 1024   # scoped VMEM limit handed to Mosaic


def _round_up(x, m):
    return ((x + m - 1) // m) * m


def _pick_tile(n_pad, batch):
    """Big tiles amortize the ~0.35us/grid-step overhead and the f32
    accumulator read-modify-write; MXU width is only a divisibility rule."""
    t = 512
    while t > 128 and (n_pad % t) != 0:
        t //= 2
    t = min(t, n_pad)
    # keep >= 2 parallel grid units so v7x's second TensorCore is not starved
    while batch * (n_pad // t) < 2 and t > 128:
        t //= 2
    return t


# ----------------------------- kernels --------------------------------------


def _prelu(x, alpha):
    return jnp.where(x > 0.0, x, alpha * x)


def _make_agg_project_kernel(tk, seq_resident):
    """acc += bf16(adj_tile) @ seq_tile ; epilogue: bf16(acc) @ W^T + b -> PReLU."""

    def kernel(alpha_ref, seq_ref, adj_ref, w_ref, bias_ref, out_ref, acc_ref):
        k = pl.program_id(2)

        @pl.when(k == 0)
        def _():
            acc_ref[...] = jnp.zeros_like(acc_ref)

        if seq_resident:
            start = pl.multiple_of(k * tk, tk)
            seq_tile = seq_ref[0, pl.ds(start, tk), :]
        else:
            seq_tile = seq_ref[0]

        # adjacency stays in its HBM dtype; cast the tile just before the MXU.
        acc_ref[...] += jnp.dot(adj_ref[0].astype(jnp.bfloat16), seq_tile,
                                preferred_element_type=jnp.float32)

        @pl.when(k == pl.num_programs(2) - 1)
        def _():
            proj = jnp.dot(acc_ref[...].astype(jnp.bfloat16), w_ref[...],
                           preferred_element_type=jnp.float32)
            out = proj + bias_ref[...]
            out_ref[0] = _prelu(out, alpha_ref[0]).astype(out_ref.dtype)

    return kernel


def _make_agg_kernel(tk, fts_resident):
    """acc += bf16(adj_tile) @ fts_tile ; epilogue: acc + bias -> PReLU."""

    def kernel(alpha_ref, fts_ref, adj_ref, bias_ref, out_ref, acc_ref):
        k = pl.program_id(2)

        @pl.when(k == 0)
        def _():
            acc_ref[...] = jnp.zeros_like(acc_ref)

        if fts_resident:
            start = pl.multiple_of(k * tk, tk)
            fts_tile = fts_ref[0, pl.ds(start, tk), :]
        else:
            fts_tile = fts_ref[0]

        acc_ref[...] += jnp.dot(adj_ref[0].astype(jnp.bfloat16), fts_tile,
                                preferred_element_type=jnp.float32)

        @pl.when(k == pl.num_programs(2) - 1)
        def _():
            out = acc_ref[...] + bias_ref[...]
            out_ref[0] = _prelu(out, alpha_ref[0]).astype(out_ref.dtype)

    return kernel


def _linear_kernel(seq_ref, w_ref, out_ref):
    """fts = seq @ W^T (weight pre-transposed + padded, bf16)."""
    out_ref[0] = jnp.dot(seq_ref[0], w_ref[...],
                         preferred_element_type=jnp.float32
                         ).astype(out_ref.dtype)


# ----------------------------- wrapper --------------------------------------


def gcn_forward(seq, adj, weight, bias, prelu_alpha):
    """seq: (B, N, F_in), adj: (B, N, N) dense, weight: (F_out, F_in),
       bias: (F_out,), prelu_alpha: scalar.  Returns (B, N, F_out) f32."""
    # TODO(synk): the sparse=True (torch.spmm) branch is not implemented; only
    # the dense torch.bmm adjacency path is translated.
    B, N, F_in = seq.shape
    F_out = weight.shape[0]

    fin_pad = _round_up(F_in, 128)
    fout_pad = _round_up(F_out, 128)
    n_pad = _round_up(N, 128)
    tm = tk = _pick_tile(n_pad, B)

    # seq: pad + cast to bf16 once (O(B*N*F_in), negligible vs the adjacency).
    seq_bf = jnp.pad(seq.astype(jnp.float32),
                     ((0, 0), (0, n_pad - N), (0, fin_pad - F_in))
                     ).astype(jnp.bfloat16)
    # adj: keep the caller's dtype in HBM (no wrapper cast pass); pad only if
    # N is not already tile-aligned.  In-kernel bf16 cast feeds the MXU.
    adj_hbm = adj if n_pad == N else jnp.pad(
        adj, ((0, 0), (0, n_pad - N), (0, n_pad - N)))
    # Pre-transposed bf16 weight (F_in_pad, F_out_pad): resident, no per-step w.T.
    w_t = jnp.pad(weight.astype(jnp.float32).T,
                  ((0, fin_pad - F_in), (0, fout_pad - F_out))
                  ).astype(jnp.bfloat16)
    bias_p = jnp.pad(bias.astype(jnp.float32).reshape(1, F_out),
                     ((0, 0), (0, fout_pad - F_out)))
    alpha1d = jnp.asarray(prelu_alpha, jnp.float32).reshape(1)

    grid = (B, n_pad // tm, n_pad // tk)
    cparams = pltpu.CompilerParams(
        dimension_semantics=("parallel", "parallel", "arbitrary"),
        vmem_limit_bytes=_VMEM_LIMIT_BYTES)

    adj_vmem = 2 * tm * tk * jnp.dtype(adj_hbm.dtype).itemsize  # double-buffered

    if F_in <= F_out:
        # Aggregate (adj @ seq) first; project to F_out only in the epilogue.
        seq_resident = (2 * n_pad * fin_pad * 2 + adj_vmem
                        + tm * fin_pad * 4 + 2 * tm * fout_pad * 4
                        + 2 * fin_pad * fout_pad * 2) <= _VMEM_SOFT_BUDGET
        if seq_resident:
            seq_spec = pl.BlockSpec((1, n_pad, fin_pad),
                                    lambda b, i, k, a: (b, 0, 0))
        else:
            seq_spec = pl.BlockSpec((1, tk, fin_pad),
                                    lambda b, i, k, a: (b, k, 0))

        out_p = pl.pallas_call(
            _make_agg_project_kernel(tk, seq_resident),
            out_shape=jax.ShapeDtypeStruct((B, n_pad, fout_pad), jnp.float32),
            grid_spec=pltpu.PrefetchScalarGridSpec(
                num_scalar_prefetch=1,                      # alpha in SMEM
                grid=grid,
                in_specs=[
                    seq_spec,                                               # seq
                    pl.BlockSpec((1, tm, tk), lambda b, i, k, a: (b, i, k)),  # adj
                    pl.BlockSpec((fin_pad, fout_pad),
                                 lambda b, i, k, a: (0, 0)),                 # W^T
                    pl.BlockSpec((1, fout_pad), lambda b, i, k, a: (0, 0)),   # bias
                ],
                out_specs=pl.BlockSpec((1, tm, fout_pad),
                                       lambda b, i, k, a: (b, i, 0)),
                scratch_shapes=[pltpu.VMEM((tm, fin_pad), jnp.float32)],
            ),
            compiler_params=cparams,
        )(alpha1d, seq_bf, adj_hbm, w_t, bias_p)
    else:
        # Project once (B*N rows total), then aggregate adj @ fts.
        fts_bf = pl.pallas_call(
            _linear_kernel,
            out_shape=jax.ShapeDtypeStruct((B, n_pad, fout_pad), jnp.bfloat16),
            grid_spec=pltpu.PrefetchScalarGridSpec(
                num_scalar_prefetch=0,
                grid=(B, n_pad // tm),
                in_specs=[
                    pl.BlockSpec((1, tm, fin_pad), lambda b, i: (b, i, 0)),
                    pl.BlockSpec((fin_pad, fout_pad), lambda b, i: (0, 0)),
                ],
                out_specs=pl.BlockSpec((1, tm, fout_pad), lambda b, i: (b, i, 0)),
            ),
            compiler_params=pltpu.CompilerParams(
                dimension_semantics=("parallel", "parallel"),
                vmem_limit_bytes=_VMEM_LIMIT_BYTES),
        )(seq_bf, w_t)

        fts_resident = (2 * n_pad * fout_pad * 2 + adj_vmem
                        + tm * fout_pad * 4
                        + 2 * tm * fout_pad * 4) <= _VMEM_SOFT_BUDGET
        if fts_resident:
            fts_spec = pl.BlockSpec((1, n_pad, fout_pad),
                                    lambda b, i, k, a: (b, 0, 0))
        else:
            fts_spec = pl.BlockSpec((1, tk, fout_pad),
                                    lambda b, i, k, a: (b, k, 0))

        out_p = pl.pallas_call(
            _make_agg_kernel(tk, fts_resident),
            out_shape=jax.ShapeDtypeStruct((B, n_pad, fout_pad), jnp.float32),
            grid_spec=pltpu.PrefetchScalarGridSpec(
                num_scalar_prefetch=1,                      # alpha in SMEM
                grid=grid,
                in_specs=[
                    fts_spec,                                               # fts
                    pl.BlockSpec((1, tm, tk), lambda b, i, k, a: (b, i, k)),  # adj
                    pl.BlockSpec((1, fout_pad), lambda b, i, k, a: (0, 0)),   # bias
                ],
                out_specs=pl.BlockSpec((1, tm, fout_pad),
                                       lambda b, i, k, a: (b, i, 0)),
                scratch_shapes=[pltpu.VMEM((tm, fout_pad), jnp.float32)],
            ),
            compiler_params=cparams,
        )(alpha1d, fts_bf, adj_hbm, bias_p)

    # Slice padding off only when padding was actually added.
    if n_pad == N and fout_pad == F_out:
        return out_p
    if n_pad == N:
        return out_p[..., :F_out]
    return out_p[:, :N, :F_out]


# ----------------------------- test harness ---------------------------------


def _xavier_uniform(key, shape):
    # matches torch.nn.init.xavier_uniform_ for a (fan_out, fan_in) matrix
    fan_out, fan_in = shape
    limit = (6.0 / (fan_in + fan_out)) ** 0.5
    return jax.random.uniform(key, shape, jnp.float32, -limit, limit)


def _reference(seq, adj, weight, bias, alpha, *, project_first):
    """Pure-JAX reference replicating the kernel's bf16 rounding points."""
    f32 = jnp.float32
    hp = jax.lax.Precision.HIGHEST
    seq_r = seq.astype(jnp.bfloat16).astype(f32)
    adj_r = adj.astype(jnp.bfloat16).astype(f32)
    w_b = weight.astype(f32).T.astype(jnp.bfloat16).astype(f32)
    if project_first:
        fts = jnp.einsum("bnf,fo->bno", seq_r, w_b,
                         precision=hp).astype(jnp.bfloat16).astype(f32)
        out = jnp.einsum("bnm,bmf->bnf", adj_r, fts, precision=hp) + bias
    else:
        agg = jnp.einsum("bnm,bmf->bnf", adj_r, seq_r,
                         precision=hp).astype(jnp.bfloat16).astype(f32)
        out = jnp.einsum("bnf,fo->bno", agg, w_b, precision=hp) + bias
    return jnp.where(out > 0, out, alpha * out)


if __name__ == "__main__":
    key = jax.random.PRNGKey(0)
    k_seq, k_adj, k_w, k_seq2, k_adj2, k_w2, k_b2 = jax.random.split(key, 7)

    # ---- case 1: F_in < F_out (aggregate-then-project path) ----
    B, N, F_in, F_out = 2, 16, 8, 32
    seq = jax.random.normal(k_seq, (B, N, F_in), jnp.float32)
    adj = jax.random.uniform(k_adj, (B, N, N), jnp.float32)
    adj = adj / jnp.sum(adj, axis=-1, keepdims=True)        # row-stochastic graph op
    weight = _xavier_uniform(k_w, (F_out, F_in))             # nn.Linear weight (F_out, F_in)
    bias = jnp.zeros((F_out,), jnp.float32)                  # GCN bias init: 0
    alpha = 0.25                                             # nn.PReLU default

    out = jax.block_until_ready(gcn_forward(seq, adj, weight, bias, alpha))
    ref = _reference(seq, adj, weight, bias, alpha, project_first=False)
    assert out.shape == (B, N, F_out)
    assert jnp.allclose(out, ref, atol=2e-2, rtol=2e-2), \
        float(jnp.max(jnp.abs(out - ref)))

    # ---- case 2: F_in > F_out (project-first path) ----
    B2, N2, F_in2, F_out2 = 2, 24, 32, 8
    seq2 = jax.random.normal(k_seq2, (B2, N2, F_in2), jnp.float32)
    adj2 = jax.random.uniform(k_adj2, (B2, N2, N2), jnp.float32)
    adj2 = adj2 / jnp.sum(adj2, axis=-1, keepdims=True)
    weight2 = _xavier_uniform(k_w2, (F_out2, F_in2))
    bias2 = 0.1 * jax.random.normal(k_b2, (F_out2,), jnp.float32)

    out2 = jax.block_until_ready(gcn_forward(seq2, adj2, weight2, bias2, alpha))
    ref2 = _reference(seq2, adj2, weight2, bias2, alpha, project_first=True)
    assert out2.shape == (B2, N2, F_out2)
    assert jnp.allclose(out2, ref2, atol=2e-2, rtol=2e-2), \
        float(jnp.max(jnp.abs(out2 - ref2)))

    print("KERNEL_OK")
</pallas_src>

<mosaic_0001>
module attributes {stable_mosaic.version = 11 : i64} {
  func.func @kernel(%arg0: i32, %arg1: i32, %arg2: i32, %arg3: memref<1xf32, #tpu.memory_space<smem>>, %arg4: memref<1x128x128xbf16, #tpu.memory_space<vmem>>, %arg5: memref<1x128x128xf32, #tpu.memory_space<vmem>>, %arg6: memref<128x128xbf16, #tpu.memory_space<vmem>>, %arg7: memref<1x128xf32, #tpu.memory_space<vmem>>, %arg8: memref<1x128x128xf32, #tpu.memory_space<vmem>>, %arg9: memref<128x128xf32, #tpu.memory_space<vmem>>) attributes {dimension_semantics = [#tpu.dimension_semantics<parallel>, #tpu.dimension_semantics<parallel>, #tpu.dimension_semantics<arbitrary>], iteration_bounds = array<i64: 2, 1, 1>, scalar_prefetch = 1 : i64, scratch_operands = 1 : i64, tpu.core_type = #tpu.core_type<tc>, window_params = [{transform_indices = @transform_0, window_bounds = array<i64: 1, 128, 128>}, {transform_indices = @transform_1, window_bounds = array<i64: 1, 128, 128>}, {pipeline_mode = #tpu.pipeline_mode<synchronous>, transform_indices = @transform_2, window_bounds = array<i64: 128, 128>}, {pipeline_mode = #tpu.pipeline_mode<synchronous>, transform_indices = @transform_3, window_bounds = array<i64: 1, 128>}, {transform_indices = @transform_4, window_bounds = array<i64: 1, 128, 128>}]} {
    %c0_i32 = arith.constant 0 : i32
    %0 = arith.cmpi eq, %arg2, %c0_i32 : i32
    %1 = arith.extui %0 : i1 to i32
    %c0_i32_0 = arith.constant 0 : i32
    %2 = arith.cmpi ne, %1, %c0_i32_0 : i32
    scf.if %2 {
      %cst_11 = arith.constant 0.000000e+00 : f32
      %18 = vector.broadcast %cst_11 : f32 to vector<128x128xf32>
      %c0_12 = arith.constant 0 : index
      %c0_13 = arith.constant 0 : index
      %19 = vector.load %arg9[%c0_12, %c0_13] : memref<128x128xf32, #tpu.memory_space<vmem>>, vector<128x128xf32>
      tpu.vector_store %arg9[%c0_12, %c0_13], %18 {strides = array<i32>} : memref<128x128xf32, #tpu.memory_space<vmem>>, vector<128x128xf32>,
    } else {
    }
    %c128_i32 = arith.constant 128 : i32
    %3 = arith.muli %arg2, %c128_i32 : i32
    %4 = tpu.assume_multiple %3, 128 : i32
    %c0 = arith.constant 0 : index
    %5 = arith.index_cast %4 : i32 to index
    %c0_1 = arith.constant 0 : index
    %6 = vector.load %arg4[%c0, %5, %c0_1] : memref<1x128x128xbf16, #tpu.memory_space<vmem>>, vector<1x128x128xbf16>
    %7 = vector.shape_cast %6 : vector<1x128x128xbf16> to vector<128x128xbf16>
    %c0_2 = arith.constant 0 : index
    %c0_3 = arith.constant 0 : index
    %8 = vector.load %arg9[%c0_2, %c0_3] : memref<128x128xf32, #tpu.memory_space<vmem>>, vector<128x128xf32>
    %c0_4 = arith.constant 0 : index
    %c0_5 = arith.constant 0 : index
    %c0_6 = arith.constant 0 : index
    %9 = vector.load %arg5[%c0_4, %c0_5, %c0_6] : memref<1x128x128xf32, #tpu.memory_space<vmem>>, vector<1x128x128xf32>
    %10 = vector.shape_cast %9 : vector<1x128x128xf32> to vector<128x128xf32>
    %11 = arith.truncf %10 : vector<128x128xf32> to vector<128x128xbf16>
    %cst = arith.constant dense<0.000000e+00> : vector<128x128xf32>
    %12 = tpu.matmul %11, %7, %cst {dimension_numbers = #tpu.dot_dimension_numbers<[1], [0], [0], [1], [0, 0, 1, 1], [], []>} : vector<128x128xbf16>, vector<128x128xbf16>, vector<128x128xf32> -> vector<128x128xf32>
    %13 = arith.addf %8, %12 : vector<128x128xf32>
    %c0_7 = arith.constant 0 : index
    %c0_8 = arith.constant 0 : index
    %14 = vector.load %arg9[%c0_7, %c0_8] : memref<128x128xf32, #tpu.memory_space<vmem>>, vector<128x128xf32>
    tpu.vector_store %arg9[%c0_7, %c0_8], %13 {strides = array<i32>} : memref<128x128xf32, #tpu.memory_space<vmem>>, vector<128x128xf32>,
    %c0_i32_9 = arith.constant 0 : i32
    %15 = arith.cmpi eq, %arg2, %c0_i32_9 : i32
    %16 = arith.extui %15 : i1 to i32
    %c0_i32_10 = arith.constant 0 : i32
    %17 = arith.cmpi ne, %16, %c0_i32_10 : i32
    scf.if %17 {
      %c0_11 = arith.constant 0 : index
      %c0_12 = arith.constant 0 : index
      %18 = vector.load %arg9[%c0_11, %c0_12] : memref<128x128xf32, #tpu.memory_space<vmem>>, vector<128x128xf32>
      %19 = arith.truncf %18 : vector<128x128xf32> to vector<128x128xbf16>
      %c0_13 = arith.constant 0 : index
      %c0_14 = arith.constant 0 : index
      %20 = vector.load %arg6[%c0_13, %c0_14] : memref<128x128xbf16, #tpu.memory_space<vmem>>, vector<128x128xbf16>
      %cst_15 = arith.constant dense<0.000000e+00> : vector<128x128xf32>
      %21 = tpu.matmul %19, %20, %cst_15 {dimension_numbers = #tpu.dot_dimension_numbers<[1], [0], [0], [1], [0, 0, 1, 1], [], []>} : vector<128x128xbf16>, vector<128x128xbf16>, vector<128x128xf32> -> vector<128x128xf32>
      %c0_16 = arith.constant 0 : index
      %c0_17 = arith.constant 0 : index
      %22 = vector.load %arg7[%c0_16, %c0_17] : memref<1x128xf32, #tpu.memory_space<vmem>>, vector<1x128xf32>
      %23 = vector.broadcast %22 : vector<1x128xf32> to vector<128x128xf32>
      %24 = arith.addf %21, %23 : vector<128x128xf32>
      %c0_18 = arith.constant 0 : index
      %25 = memref.load %arg3[%c0_18] : memref<1xf32, #tpu.memory_space<smem>>
      %cst_19 = arith.constant 0.000000e+00 : f32
      %26 = vector.broadcast %cst_19 : f32 to vector<128x128xf32>
      %27 = arith.cmpf ogt, %24, %26 : vector<128x128xf32>
      %28 = vector.broadcast %25 : f32 to vector<128x128xf32>
      %29 = arith.mulf %28, %24 : vector<128x128xf32>
      %30 = arith.select %27, %24, %29 : vector<128x128xi1>, vector<128x128xf32>
      %c0_20 = arith.constant 0 : index
      %c0_21 = arith.constant 0 : index
      %c0_22 = arith.constant 0 : index
      %31 = vector.load %arg8[%c0_20, %c0_21, %c0_22] : memref<1x128x128xf32, #tpu.memory_space<vmem>>, vector<1x128x128xf32>
      %32 = vector.shape_cast %31 : vector<1x128x128xf32> to vector<128x128xf32>
      %33 = vector.shape_cast %30 : vector<128x128xf32> to vector<1x128x128xf32>
      tpu.vector_store %arg8[%c0_20, %c0_21, %c0_22], %33 {strides = array<i32>} : memref<1x128x128xf32, #tpu.memory_space<vmem>>, vector<1x128x128xf32>,
    } else {
    }
    return
  }
  func.func @transform_0(%arg0: i32, %arg1: i32, %arg2: i32, %arg3: memref<1xf32, #tpu.memory_space<smem>>) -> (i32, i32, i32) {
    %c0_i32 = arith.constant 0 : i32
    %c0_i32_0 = arith.constant 0 : i32
    %c0_i32_1 = arith.constant 0 : i32
    return %arg0, %c0_i32, %c0_i32_0 : i32, i32, i32
  }
  func.func @transform_1(%arg0: i32, %arg1: i32, %arg2: i32, %arg3: memref<1xf32, #tpu.memory_space<smem>>) -> (i32, i32, i32) {
    %c0_i32 = arith.constant 0 : i32
    return %arg0, %arg1, %arg2 : i32, i32, i32
  }
  func.func @transform_2(%arg0: i32, %arg1: i32, %arg2: i32, %arg3: memref<1xf32, #tpu.memory_space<smem>>) -> (i32, i32) {
    %c0_i32 = arith.constant 0 : i32
    %c0_i32_0 = arith.constant 0 : i32
    %c0_i32_1 = arith.constant 0 : i32
    return %c0_i32, %c0_i32_0 : i32, i32
  }
  func.func @transform_3(%arg0: i32, %arg1: i32, %arg2: i32, %arg3: memref<1xf32, #tpu.memory_space<smem>>) -> (i32, i32) {
    %c0_i32 = arith.constant 0 : i32
    %c0_i32_0 = arith.constant 0 : i32
    %c0_i32_1 = arith.constant 0 : i32
    return %c0_i32, %c0_i32_0 : i32, i32
  }
  func.func @transform_4(%arg0: i32, %arg1: i32, %arg2: i32, %arg3: memref<1xf32, #tpu.memory_space<smem>>) -> (i32, i32, i32) {
    %c0_i32 = arith.constant 0 : i32
    %c0_i32_0 = arith.constant 0 : i32
    return %arg0, %arg1, %c0_i32 : i32, i32, i32
  }
}

</mosaic_0001>

<bundles_post_ra>
// kernel: tpu_custom_call.1
= control target key start
LH: loop header
LB: loop body
LE: loop exit
PB: predicated region body
PF: predicated region fallthrough
CT: control target
= control target key end

     0   :  { %s1783_s0 = inlined_call_operand.<no memory space> [shape: f32[1], index: 0, kind: input, shape index: {}]   ;;  %s1784_s1 = inlined_call_operand.hbm [shape: bf16[2,128,128], index: 1, kind: input, shape index: {}]   ;;  %s1785_s2 = inlined_call_operand.hbm [shape: f32[2,128,128], index: 2, kind: input, shape index: {}]   ;;  %s1786_s3 = inlined_call_operand.hbm [shape: bf16[128,128], index: 3, kind: input, shape index: {}]   ;;  %s1787_s4 = inlined_call_operand.vmem [shape: f32[1,128], index: 4, kind: input, shape index: {}]   ;;  %s1788_s5 = inlined_call_operand.hbm [shape: f32[2,128,128], index: 5, kind: output, shape index: {}]  }
   0x1   :  { %1795 = sst [smem:[#allocation18_spill]] %s1784_s1 }
   0x2   :  { %1796 = sst [smem:[#allocation19_spill]] %s1786_s3 }
   0x3   :  { %10 = sst [smem:[#allocation4]] %s1783_s0 }
   0x4   :  { %11 = vsyncpa [#allocation6], 0 }
   0x5   :  { %13 = vsyncpa [#allocation6 + $0x1], 0 }
   0x6   :  { %14 = vsyncpa [#allocation9], 0 }
   0x7   :  { %16 = vsyncpa [#allocation9 + $0x1], 0 }
   0x8   :  { %17 = vsyncpa [#allocation7], 0 }
   0x9   :  { %19 = vsyncpa [#allocation7 + $0x1], 0  ;;  %s1423_s20 = smov 0   ;;  %s1425_s21 = smov 0  }
   0xa   :  { %s1427_s22 = smov 0   ;;  %s1429_s23 = smov 0  }
   0xb   :  { %s1431_s24 = smov 0   ;;  %s1433_s25 = smov 0  }
   0xc LB: > { %s1454_s0 = sadd.s32 4294967295, %s1378_s25   ;;  %s964_s26 = sadd.s32 4294967294, %s1378_s25   ;;  %s1378_s25 = sphi %s1433_s25, %s25_s25   ;;  %s1374_s24 = sphi %s1431_s24, %s1824_s24   ;;  %s1370_s23 = sphi %s1429_s23, %s1823_s23   ;;  %s1366_s22 = sphi %s1427_s22, %s1822_s22   ;;  %s1362_s21 = sphi %s1425_s21, %s1821_s21   ;;  %s1358_s20 = sphi %s1423_s20, %s1820_s20  }
   0xd   : > { %p64_p0 = scmp.ne.s32.totalorder %s1362_s21, %s1358_s20  ;;  %p1789_p1 = scmp.eq.s32.totalorder %s1454_s0, 0 }
   0xe   : > { %p168_p3 = scmp.eq.s32.totalorder %s964_s26, 1  ;;  %p965_p5 = scmp.ge.s32.totalorder %s1378_s25, 1 }
   0xf   : > { %p1463_p4 = por %p1789_p1, %p64_p0  ;;  %p175_p7 = scmp.lt.s32.totalorder %s1378_s25, 3 }
  0x10   : > { %p1468_p6 = por %p168_p3, %p64_p0  ;;  %s1380_s30 = smov [#allocation10]  }
  0x11   : > { %s1797_s27 = scalar_select %p1463_p4, 1, 0 }
  0x12   : > { %s1798_s28 = scalar_select %p1468_p6, 1, 0 }
  0x13   : > { %p1473_p8 = pnand %p965_p5, %p175_p7  ;;  %s187_s6 = sshll.u32 %s1380_s30, 4  ;;  %s188_s6 = int_to_ptr.vmem [resolvable:$true] %s187_s6 }
  0x14   : > { %s44_s8 = sadd.s32 1, %s1374_s24  ;;  %s1801_s3 = sld [smem:[#allocation19_spill]] }
  0x15   : > { %s1799_s29 = scalar_select %p1473_p8, 1, 0 }
  0x16   : > { %p1110_p9 = pneg %p1473_p8 }
  0x18   : > { %p1482_p11 = pnand %p1110_p9, %p1789_p1 }
  0x1a   : > { %s1200_s11 = scalar_lea.hbm %s1801_s3, 1024  ;;  %p1202_p13 = pneg %p1482_p11 }
  0x1b   : > { %p1201_p12 = scmp.ne.s32.totalorder %s1801_s3, %s1200_s11  ;;  %p1207_p5 = scmp.lt.u32.totalorder %s1200_s11, %s1801_s3 }
  0x1d   : > { %p1203_p0 = pnand %p1202_p13, %p1201_p12 }
  0x1f   : > { %p1204_p3 = pneg %p1203_p0 }
  0x21   : > { %p1209_p7 = pnand %p1207_p5, %p1204_p3 }
  0x23   : > { %1212 = shalt.err (!%p1209_p7)
}
  0x24   : > { %s1213_s16 = scalar_lea.vmem %s188_s6, 1024  ;;  %p1221_p2 = scmp.lt.s32.totalorder %s188_s6, %s188_s6 }
  0x25   : > { %p1214_p9 = scmp.ne.s32.totalorder %s188_s6, %s1213_s16  ;;  %p1222_p6 = scmp.lt.s32.totalorder %s1213_s16, %s1213_s16 }
  0x27   : > { %p1216_p10 = pnand %p1214_p9, %p1202_p13  ;;  %p1223_p4 = por %p1222_p6, %p1221_p2 }
  0x29   : > { %p1217_p1 = pneg %p1216_p10 }
  0x2b   : > { %p1224_p8 = pnand %p1223_p4, %p1217_p1 }
  0x2d   : > { %1227 = shalt.err (!%p1224_p8)
}
  0x2e   : > { %s1792_s17 = smov 64   ;;  %s1793_s18 = smov 4  }
  0x2f   : > { %1113 = dma.hbm_to_vmem [thread:$0]  (!%p1482_p11), %s1801_s3, 1024, %s188_s6, [#allocation9], %s1792_s17, %s1792_s17, %s1793_s18  }
  0x30   : > { %p46_p1 = scmp.ge.s32.totalorder %s44_s8, 2  ;;  %s51_s30 = sadd.s32 1, %s1366_s22 }
  0x31   : > { %p58_p2 = scmp.ne.s32.totalorder %s1366_s22, %s1362_s21  ;;  %p59_p4 = scmp.eq.s32.totalorder %s1378_s25, 0 }
  0x32   : > { %s1826_s8 = smov (%p46_p1, %s44_s8), 0  ;;  %p1804_p8 = scmp.eq.s32.totalorder %s1454_s0, 1 }
  0x33   : > { %1802 = sst [smem:[#allocation16_spill]] %s1826_s8  ;;  %p1512_p6 = por %p59_p4, %p58_p2 }
  0x34   : > { %p1518_p10 = por %p1804_p8, %p58_p2  ;;  %s48_s10 = ssub.s32 %s1374_s24, %s1826_s8 }
  0x35   : > { %p1126_p11 = scmp.lt.s32.totalorder %s1378_s25, 2  ;;  %p49_p12 = scmp.eq.s32.totalorder %s48_s10, 0 }
  0x36   : > { %s1526_s6 = sand.u32 1, %s1366_s22   ;;  %s1001_s13 = sshll.u32 %s1374_s24, 10 }
  0x37   : > { %s968_s11 = sshll.u32 %s1526_s6, 6  ;;  %s1807_s1 = sld [smem:[#allocation18_spill]] }
  0x38   : > { %s1530_s12 = scalar_select %p49_p12, %s1366_s22, %s51_s30  }
  0x39   : > { %s208_s19 = scalar_lea.vmem [#allocation5], %s968_s11  ;;  %p1542_p13 = pnand %p1126_p11, %p1512_p6 }
  0x3a   : > { %1806 = sst [smem:[#allocation17_spill]] %s1530_s12  ;;  %s215_s26 = sshll.u32 %s208_s19, 4  ;;  %s1538_s26 = int_to_ptr.vmem [resolvable:$true] %s215_s26 }
  0x3b   : > { %s971_s17 = sshll.u32 %s1526_s6, 7  ;;  %s205_s14 = scalar_lea.sflag [#allocation6], %s1526_s6 }
  0x3c   : > { %p1230_p3 = pneg %p1542_p13 }
  0x3d   : > { %s1536_s16 = scalar_lea.hbm %s1807_s1, %s1001_s13  ;;  %s1233_s9 = scalar_lea.hbm %s1807_s1, 2048 }
  0x3e   : > { %s1228_s13 = scalar_lea.hbm %s1536_s16, 1024  ;;  %p1234_p9 = scmp.lt.u32.totalorder %s1536_s16, %s1807_s1 }
  0x3f   : > { %p1229_p0 = scmp.ne.s32.totalorder %s1536_s16, %s1228_s13  ;;  %p1235_p1 = scmp.lt.u32.totalorder %s1233_s9, %s1228_s13 }
  0x40   : > { %p1237_p4 = scmp.lt.u32.totalorder %s1228_s13, %s1536_s16 }
  0x41   : > { %p1231_p5 = pnand %p1230_p3, %p1229_p0  ;;  %p1236_p2 = por %p1235_p1, %p1234_p9 }
  0x43   : > { %p1232_p7 = pneg %p1231_p5  ;;  %p1238_p6 = por %p1237_p4, %p1236_p2 }
  0x45   : > { %p1239_p8 = pnand %p1238_p6, %p1232_p7 }
  0x47   : > { %1242 = shalt.err (!%p1239_p8)
}
  0x48   : > { %s1243_s30 = scalar_lea.vmem %s1538_s26, 1024  ;;  %s1383_s11 = smov [#allocation5]  }
  0x49   : > { %p1244_p11 = scmp.ne.s32.totalorder %s1538_s26, %s1243_s30  ;;  %s1248_s15 = sshll.u32 %s1383_s11, 4  ;;  %s1249_s15 = int_to_ptr.vmem [resolvable:$false] %s1248_s15 }
  0x4a   : > { %s1250_s18 = scalar_lea.vmem %s1249_s15, 2048  ;;  %p1251_p5 = scmp.lt.s32.totalorder %s1538_s26, %s1249_s15 }
  0x4b   : > { %p1246_p12 = pnand %p1244_p11, %p1230_p3  ;;  %p1252_p9 = scmp.lt.s32.totalorder %s1250_s18, %s1243_s30 }
  0x4d   : > { %p1247_p0 = pneg %p1246_p12  ;;  %p1253_p1 = por %p1252_p9, %p1251_p5 }
  0x4f   : > { %p1254_p2 = pnand %p1253_p1, %p1247_p0 }
  0x51   : > { %1257 = shalt.err (!%p1254_p2)
}
  0x52   : > { %s1809_s13 = smov 4   ;;  %s1810_s9 = smov 64  }
  0x53   : > { %1117 = dma.hbm_to_vmem [thread:$0]  (!%p1542_p13), %s1536_s16, 1024, %s1538_s26, %s205_s14, %s1810_s9, %s1810_s9, %s1809_s13  }
  0x54   : > { %s1002_s19 = sshll.u32 %s1374_s24, 11  ;;  %s229_s18 = scalar_lea.vmem [#allocation8], %s971_s17 }
  0x55   : > { %s1583_s15 = scalar_lea.hbm %s1785_s2, %s1002_s19  ;;  %s239_s1 = sshll.u32 %s229_s18, 4  ;;  %s1587_s1 = int_to_ptr.vmem [resolvable:$true] %s239_s1 }
  0x56   : > { %s1811_s3 = sand.u32 1, %s1378_s25   ;;  %s1258_s12 = scalar_lea.hbm %s1583_s15, 2048 }
  0x57   : > { %s1591_s8 = scalar_lea.sflag [#allocation9], %s1811_s3  ;;  %p1259_p7 = scmp.ne.s32.totalorder %s1583_s15, %s1258_s12 }
  0x58   : > { %s1263_s6 = scalar_lea.hbm %s1785_s2, 4096  ;;  %p1264_p8 = scmp.lt.u32.totalorder %s1583_s15, %s1785_s2 }
  0x59   : > { %p1261_p4 = pnand %p1259_p7, %p1230_p3  ;;  %p1265_p11 = scmp.lt.u32.totalorder %s1263_s6, %s1258_s12 }
  0x5a   : > { %p1267_p0 = scmp.lt.u32.totalorder %s1258_s12, %s1583_s15 }
  0x5b   : > { %p1262_p6 = pneg %p1261_p4  ;;  %p1266_p12 = por %p1265_p11, %p1264_p8 }
  0x5d   : > { %p1268_p5 = por %p1267_p0, %p1266_p12 }
  0x5f   : > { %p1269_p9 = pnand %p1268_p5, %p1262_p6 }
  0x61   : > { %1272 = shalt.err (!%p1269_p9)
}
  0x62   : > { %s1273_s3 = scalar_lea.vmem %s1587_s1, 2048  ;;  %s1384_s17 = smov [#allocation8]  }
  0x63   : > { %p1274_p1 = scmp.ne.s32.totalorder %s1587_s1, %s1273_s3  ;;  %s1278_s9 = sshll.u32 %s1384_s17, 4  ;;  %s1279_s9 = int_to_ptr.vmem [resolvable:$false] %s1278_s9 }
  0x64   : > { %s1280_s19 = scalar_lea.vmem %s1279_s9, 4096  ;;  %p1281_p4 = scmp.lt.s32.totalorder %s1587_s1, %s1279_s9 }
  0x65   : > { %p1276_p2 = pnand %p1274_p1, %p1230_p3  ;;  %p1282_p8 = scmp.lt.s32.totalorder %s1280_s19, %s1273_s3 }
  0x67   : > { %p1277_p7 = pneg %p1276_p2  ;;  %p1283_p11 = por %p1282_p8, %p1281_p4 }
  0x69   : > { %p1284_p12 = pnand %p1283_p11, %p1277_p7 }
  0x6b   : > { %1287 = shalt.err (!%p1284_p12)
}
  0x6c   : > { %s1385_s12 = smov 128   ;;  %s1386_s11 = smov 8  }
  0x6d   : > { %1120 = dma.hbm_to_vmem [thread:$0]  (!%p1542_p13), %s1583_s15, 2048, %s1587_s1, %s1591_s8, %s1385_s12, %s1385_s12, %s1386_s11  }
  0x6e   : > { %p1812_p3 = scmp.ne.s32.totalorder %s1799_s29, 0 }
  0x6f   : > { %s1620_s30 = sand.u32 (!%p1812_p3), 1, %s1362_s21   ;;  %p1813_p6 = scmp.ne.s32.totalorder (!%p1812_p3), %s1797_s27, 0 }
  0x70   : > { %251 = sbr.rel (%p1812_p3) target bundleno = 636 (0x27c), region = 36  ;;  %s975_s18 = sshll.u32 (!%p1812_p3), %s1620_s30, 6 }
  0x71   : > { %s254_s16 = scalar_lea.sflag (!%p1812_p3), [#allocation6], %s1620_s30  ;;  %s1624_s26 = scalar_lea.vmem (!%p1812_p3), [#allocation5], %s975_s18 }
  0x77   : > { %1341 = dma.done.wait (%p1813_p6), %s254_s16, 1024  }
  0x78   : > { %1343 = vsyncadd (%p1813_p6), %s254_s16, 4294966272  ;;  %s262_s1 = sand.u32 1, %s1454_s0   ;;  %s976_s29 = sshll.u32 %s1620_s30, 7 }
  0x79   : > { %s263_s8 = scalar_lea.sflag [#allocation9], %s262_s1  ;;  %s1634_s10 = scalar_lea.vmem [#allocation8], %s976_s29 }
  0x7a   : > { %1345 = dma.done.wait (%p1813_p6), %s263_s8, 2048  }
  0x7b   : > { %1347 = vsyncadd (%p1813_p6), %s263_s8, 4294965248  ;;  %p1814_p13 = scmp.eq.s32.totalorder %s1454_s0, 0 }
  0x7d   : > { %1349 = dma.done.wait (%p1814_p13), [#allocation9], 1024   ;;  %p1815_p0 = pmov %p1814_p13 }
  0x7e   : > { %v1184_v0 = vld [vmem:[%s1624_s26] sm:$0xff]   ;;  %v1185_v1 = vld [vmem:[%s1624_s26 + $0x8] sm:$0xff]   ;;  %v1186_v2 = vld [vmem:[%s1624_s26 + $0x10] sm:$0xff]   ;;  %s756_s0 = sld [smem:[#allocation4]]  ;;  %s1684_s6 = scalar_lea.vmem [#allocation11], %s976_s29 }
  0x7f   : > { %1351 = vsyncadd (%p1815_p0), [#allocation9], 4294966272  ;;  %1036 = vmatprep.subr.bf16.mxu0 %v1184_v0  ;;  %v1187_v3 = vld [vmem:[%s1624_s26 + $0x18] sm:$0xff]   ;;  %v360_v4 = vld [vmem:[%s1634_s10] sm:$0xff]  ;;  %s1003_s14 = sshll.u32 %s1370_s23, 11  ;;  %s838_s13 = sshll.u32 %s1684_s6, 4  ;;  %s1731_s13 = int_to_ptr.vmem [resolvable:$true] %s838_s13 }
  0x80   : > { %1037 = vmatpush3.bf16.msra.mxu0 %v1184_v0  ;;  %v361_v5 = vld [vmem:[%s1634_s10 + $0x8] sm:$0xff]  ;;  %v1188_v7 = vld [vmem:[%s1624_s26 + $0x20] sm:$0xff]   ;;  %v1194_v11 = vld [vmem:[#allocation10 + $0x10] sm:$0xff]   ;;  %s1729_s17 = scalar_lea.hbm %s1788_s5, %s1003_s14  ;;  %s823_s9 = scalar_lea.sflag [#allocation7], %s1620_s30 }
  0x81   : > { %1038 = vmatprep.subr.bf16.mxu0 %v1185_v1  ;;  %v376_v6 = vpack.c.bf16 %v361_v5, %v360_v4  ;;  %v1192_v8 = vld [vmem:[#allocation10] sm:$0xff]   ;;  %v1193_v9 = vld [vmem:[#allocation10 + $0x8] sm:$0xff]   ;;  %v1190_v12 = vld [vmem:[%s1624_s26 + $0x30] sm:$0xff]   ;;  %s1288_s19 = scalar_lea.vmem %s1731_s13, 2048  ;;  %s1387_s12 = smov [#allocation11]  }
  0x82   : > { %v1189_v10 = vld [vmem:[%s1624_s26 + $0x28] sm:$0xff]   ;;  %1068 = vmatprep.subr.bf16.mxu1 %v1192_v8  ;;  %v1195_v13 = vld [vmem:[#allocation10 + $0x18] sm:$0xff]   ;;  %v1196_v15 = vld [vmem:[#allocation10 + $0x20] sm:$0xff]   ;;  %p1289_p5 = scmp.ne.s32.totalorder %s1731_s13, %s1288_s19  ;;  %s1292_s11 = sshll.u32 %s1387_s12, 4  ;;  %s1293_s11 = int_to_ptr.vmem [resolvable:$false] %s1292_s11 }
  0x83   : > { %1052 = vmatprep.mubr.bf16.mxu0 %v376_v6  ;;  %1069 = vmatpush3.bf16.msra.mxu1 %v1192_v8  ;;  %v1191_v14 = vld [vmem:[%s1624_s26 + $0x38] sm:$0xff]   ;;  %v362_v16 = vld [vmem:[%s1634_s10 + $0x10] sm:$0xff]  ;;  %v364_v18 = vld [vmem:[%s1634_s10 + $0x20] sm:$0xff]  ;;  %s1294_s18 = scalar_lea.vmem %s1293_s11, 4096  ;;  %p1295_p2 = scmp.lt.s32.totalorder %s1731_s13, %s1293_s11 }
  0x84   : > { %1039 = vmatpush3.bf16.msra.mxu0 %v1185_v1  ;;  %1070 = vmatprep.subr.bf16.mxu1 %v1193_v9  ;;  %v363_v17 = vld [vmem:[%s1634_s10 + $0x18] sm:$0xff]  ;;  %v365_v19 = vld [vmem:[%s1634_s10 + $0x28] sm:$0xff]  ;;  %v1198_v23 = vld [vmem:[#allocation10 + $0x30] sm:$0xff]   ;;  %p1290_p9 = pnand %p1289_p5, %p1518_p10  ;;  %p1296_p7 = scmp.lt.s32.totalorder %s1294_s18, %s1288_s19 }
  0x85   : > { %1040 = vmatprep.subr.bf16.mxu0 %v1186_v2  ;;  %v377_v20 = vpack.c.bf16 %v363_v17, %v362_v16  ;;  %v1197_v21 = vld [vmem:[#allocation10 + $0x28] sm:$0xff]   ;;  %v378_v22 = vpack.c.bf16 %v365_v19, %v364_v18  ;;  %v366_v24 = vld [vmem:[%s1634_s10 + $0x30] sm:$0xff]  ;;  %v367_v25 = vld [vmem:[%s1634_s10 + $0x38] sm:$0xff] }
  0x86   : > { %v368_v26 = vld [vmem:[%s1634_s10 + $0x40] sm:$0xff]  ;;  %v369_v27 = vld [vmem:[%s1634_s10 + $0x48] sm:$0xff]  ;;  %v379_v28 = vpack.c.bf16 %v367_v25, %v366_v24  ;;  %v370_v30 = vld [vmem:[%s1634_s10 + $0x50] sm:$0xff]  ;;  %p1291_p1 = pneg %p1290_p9  ;;  %p1297_p4 = por %p1296_p7, %p1295_p2 }
  0x87   : > { %1071 = vmatpush3.bf16.msra.mxu1 %v1193_v9  ;;  %v380_v29 = vpack.c.bf16 %v369_v27, %v368_v26  ;;  %v371_v31 = vld [vmem:[%s1634_s10 + $0x58] sm:$0xff]  ;;  %v372_v32 = vld [vmem:[%s1634_s10 + $0x60] sm:$0xff]  ;;  %v373_v33 = vld [vmem:[%s1634_s10 + $0x68] sm:$0xff] }
  0x88   : > { %1041 = vmatpush3.bf16.msra.mxu0 %v1186_v2  ;;  %1072 = vmatprep.subr.bf16.mxu1 %v1194_v11  ;;  %v381_v34 = vpack.c.bf16 %v371_v31, %v370_v30  ;;  %v382_v35 = vpack.c.bf16 %v373_v33, %v372_v32  ;;  %v374_v36 = vld [vmem:[%s1634_s10 + $0x70] sm:$0xff]  ;;  %v375_v37 = vld [vmem:[%s1634_s10 + $0x78] sm:$0xff]  ;;  %v1671_v0 = vld [vmem:[%s1787_s4] ss:$0 sm:$0xff]  ;;  %v1673_v2 = vstv %s756_s0  ;;  %p1298_p8 = pnand %p1297_p4, %p1291_p1 }
  0x89   : > { %1042 = vmatprep.subr.bf16.mxu0 %v1187_v3  ;;  %v383_v38 = vpack.c.bf16 %v375_v37, %v374_v36  ;;  %v1199_v39 = vld [vmem:[#allocation10 + $0x38] sm:$0xff]  }
  0x8b   : > { %1073 = vmatpush3.bf16.msra.mxu1 %v1194_v11 }
  0x8c   : > { %1043 = vmatpush3.bf16.msra.mxu0 %v1187_v3  ;;  %1074 = vmatprep.subr.bf16.mxu1 %v1195_v13 }
  0x8d   : > { %1044 = vmatprep.subr.bf16.mxu0 %v1188_v7 }
  0x8f   : > { %1075 = vmatpush3.bf16.msra.mxu1 %v1195_v13 }
  0x90   : > { %1045 = vmatpush3.bf16.msra.mxu0 %v1188_v7  ;;  %1076 = vmatprep.subr.bf16.mxu1 %v1196_v15 }
  0x91   : > { %1046 = vmatprep.subr.bf16.mxu0 %v1189_v10 }
  0x93   : > { %1077 = vmatpush3.bf16.msra.mxu1 %v1196_v15 }
  0x94   : > { %1047 = vmatpush3.bf16.msra.mxu0 %v1189_v10  ;;  %1078 = vmatprep.subr.bf16.mxu1 %v1197_v21 }
  0x95   : > { %1048 = vmatprep.subr.bf16.mxu0 %v1190_v12 }
  0x97   : > { %1079 = vmatpush3.bf16.msra.mxu1 %v1197_v21 }
  0x98   : > { %1049 = vmatpush3.bf16.msra.mxu0 %v1190_v12  ;;  %1080 = vmatprep.subr.bf16.mxu1 %v1198_v23 }
  0x99   : > { %1050 = vmatprep.subr.bf16.mxu0 %v1191_v14 }
  0x9b   : > { %1081 = vmatpush3.bf16.msra.mxu1 %v1198_v23 }
  0x9c   : > { %1051 = vmatpush3.bf16.msra.mxu0 %v1191_v14  ;;  %1082 = vmatprep.subr.bf16.mxu1 %v1199_v39 }
  0x9f   : > { %1053 = vmatmul.mubr.bf16.vlgmr.msra.gmra.mrb[0].mxu0 %v377_v20  ;;  %1083 = vmatpush3.bf16.msra.mxu1 %v1199_v39 }
  0xa0   : > { %1056 = vmatprep.mubr.bf16.mxu0 %v378_v22 }
  0xa7   : > { %1057 = vmatmul.mubr.bf16.gmra.mrb[4].mxu0 %v379_v28 }
  0xa8   : > { %1060 = vmatprep.mubr.bf16.mxu0 %v380_v29 }
  0xaf   : > { %1061 = vmatmul.mubr.bf16.gmra.mrb[8].mxu0 %v381_v34 }
  0xb0   : > { %1064 = vmatprep.mubr.bf16.mxu0 %v382_v35 }
  0xb7   : > { %1065 = vmatmul.mubr.bf16.gmra.mrb[12].mxu0 %v383_v38 }
 0x172   : > { %v1054_v40 = vpop.f32.mrb[0].mxu0 }
 0x173   : > { %v466_v41 = vpop.f32.mrb[1].mxu0 }
 0x174   : > { %v1055_v42 = vpop.f32.mrb[2].mxu0 }
 0x175   : > { %v581_v43 = vpack.c.bf16 %v1055_v42, %v1054_v40  ;;  %v469_v44 = vpop.f32.mrb[3].mxu0 }
 0x176   : > { %v580_v45 = vpack.c.bf16 %v469_v44, %v466_v41 }
 0x178   : > { %1084 = vmatprep.mubr.bf16.mxu1 %v580_v45 }
 0x179   : > { %1085 = vmatmul.mubr.bf16.vlgmr.msra.gmra.mrb[0].mxu1 %v581_v43 }
 0x17a   : > { %v1058_v46 = vpop.f32.mrb[4].mxu0 }
 0x17b   : > { %v482_v47 = vpop.f32.mrb[5].mxu0 }
 0x17c   : > { %v1059_v48 = vpop.f32.mrb[6].mxu0 }
 0x17d   : > { %v583_v49 = vpack.c.bf16 %v1059_v48, %v1058_v46  ;;  %v485_v50 = vpop.f32.mrb[7].mxu0 }
 0x17e   : > { %v582_v51 = vpack.c.bf16 %v485_v50, %v482_v47 }
 0x180   : > { %1088 = vmatprep.mubr.bf16.mxu1 %v582_v51 }
 0x181   : > { %1089 = vmatmul.mubr.bf16.gmra.mrb[4].mxu1 %v583_v49 }
 0x182   : > { %v1062_v52 = vpop.f32.mrb[8].mxu0 }
 0x183   : > { %v498_v53 = vpop.f32.mrb[9].mxu0 }
 0x184   : > { %v1063_v54 = vpop.f32.mrb[10].mxu0 }
 0x185   : > { %v585_v55 = vpack.c.bf16 %v1063_v54, %v1062_v52  ;;  %v501_v56 = vpop.f32.mrb[11].mxu0 }
 0x186   : > { %v584_v57 = vpack.c.bf16 %v501_v56, %v498_v53 }
 0x188   : > { %1092 = vmatprep.mubr.bf16.mxu1 %v584_v57 }
 0x189   : > { %1093 = vmatmul.mubr.bf16.gmra.mrb[8].mxu1 %v585_v55 }
 0x18a   : > { %v1066_v58 = vpop.f32.mrb[12].mxu0 }
 0x18b   : > { %v514_v59 = vpop.f32.mrb[13].mxu0 }
 0x18c   : > { %v1067_v60 = vpop.f32.mrb[14].mxu0 }
 0x18d   : > { %v587_v61 = vpack.c.bf16 %v1067_v60, %v1066_v58  ;;  %v517_v62 = vpop.f32.mrb[15].mxu0 }
 0x18e   : > { %v586_v63 = vpack.c.bf16 %v517_v62, %v514_v59 }
 0x190   : > { %1096 = vmatprep.mubr.bf16.mxu1 %v586_v63 }
 0x191   : > { %1097 = vmatmul.mubr.bf16.gmra.mrb[12].mxu1 %v587_v61 }
 0x24c   : > { %v1086_v1 = vpop.f32.mrb[0].mxu1 }
 0x24d   : > { %v702_v3 = vadd.f32 %v1086_v1, %v1671_v0  ;;  %v693_v4 = vpop.f32.mrb[1].mxu1 }
 0x24e   : > { %v694_v5 = vadd.f32 %v1671_v0, %v693_v4  ;;  %v1087_v6 = vpop.f32.mrb[2].mxu1 }
 0x24f   : > { %vm759_vm0 = vcmp.gt.f32.partialorder %v702_v3, 0.0  ;;  %v776_v7 = vmul.f32 %v1673_v2, %v702_v3  ;;  %v705_v8 = vadd.f32 %v1087_v6, %v1671_v0  ;;  %v696_v9 = vpop.f32.mrb[3].mxu1 }
 0x250   : > { %vm757_vm1 = vcmp.gt.f32.partialorder %v694_v5, 0.0  ;;  %v774_v10 = vmul.f32 %v1673_v2, %v694_v5  ;;  %v697_v11 = vadd.f32 %v1671_v0, %v696_v9 }
 0x251   : > { %v792_v12 = vsel %vm759_vm0, %v702_v3, %v776_v7  ;;  %vm760_vm2 = vcmp.gt.f32.partialorder %v705_v8, 0.0  ;;  %v777_v13 = vmul.f32 %v1673_v2, %v705_v8 }
 0x252   : > { %808 = vst [vmem:[%s1684_s6 + $0x10] sm:$0xff] %v792_v12  ;;  %v790_v14 = vsel %vm757_vm1, %v694_v5, %v774_v10  ;;  %vm758_vm3 = vcmp.gt.f32.partialorder %v697_v11, 0.0  ;;  %v775_v15 = vmul.f32 %v1673_v2, %v697_v11 }
 0x253   : > { %806 = vst [vmem:[%s1684_s6] sm:$0xff] %v790_v14  ;;  %v793_v16 = vsel %vm760_vm2, %v705_v8, %v777_v13 }
 0x254   : > { %809 = vst [vmem:[%s1684_s6 + $0x18] sm:$0xff] %v793_v16  ;;  %v791_v17 = vsel %vm758_vm3, %v697_v11, %v775_v15  ;;  %v1090_v18 = vpop.f32.mrb[4].mxu1 }
 0x255   : > { %807 = vst [vmem:[%s1684_s6 + $0x8] sm:$0xff] %v791_v17  ;;  %v718_v19 = vadd.f32 %v1090_v18, %v1671_v0  ;;  %v709_v20 = vpop.f32.mrb[5].mxu1 }
 0x256   : > { %v710_v21 = vadd.f32 %v1671_v0, %v709_v20  ;;  %v1091_v22 = vpop.f32.mrb[6].mxu1 }
 0x257   : > { %vm763_vm4 = vcmp.gt.f32.partialorder %v718_v19, 0.0  ;;  %v780_v23 = vmul.f32 %v1673_v2, %v718_v19  ;;  %v721_v24 = vadd.f32 %v1091_v22, %v1671_v0  ;;  %v712_v25 = vpop.f32.mrb[7].mxu1 }
 0x258   : > { %vm761_vm5 = vcmp.gt.f32.partialorder %v710_v21, 0.0  ;;  %v778_v26 = vmul.f32 %v1673_v2, %v710_v21  ;;  %v713_v27 = vadd.f32 %v1671_v0, %v712_v25 }
 0x259   : > { %v796_v28 = vsel %vm763_vm4, %v718_v19, %v780_v23  ;;  %vm764_vm6 = vcmp.gt.f32.partialorder %v721_v24, 0.0  ;;  %v781_v29 = vmul.f32 %v1673_v2, %v721_v24 }
 0x25a   : > { %812 = vst [vmem:[%s1684_s6 + $0x30] sm:$0xff] %v796_v28  ;;  %v794_v30 = vsel %vm761_vm5, %v710_v21, %v778_v26  ;;  %vm762_vm7 = vcmp.gt.f32.partialorder %v713_v27, 0.0  ;;  %v779_v31 = vmul.f32 %v1673_v2, %v713_v27 }
 0x25b   : > { %810 = vst [vmem:[%s1684_s6 + $0x20] sm:$0xff] %v794_v30  ;;  %v797_v32 = vsel %vm764_vm6, %v721_v24, %v781_v29 }
 0x25c   : > { %813 = vst [vmem:[%s1684_s6 + $0x38] sm:$0xff] %v797_v32  ;;  %v795_v33 = vsel %vm762_vm7, %v713_v27, %v779_v31  ;;  %v1094_v34 = vpop.f32.mrb[8].mxu1 }
 0x25d   : > { %811 = vst [vmem:[%s1684_s6 + $0x28] sm:$0xff] %v795_v33  ;;  %v734_v35 = vadd.f32 %v1094_v34, %v1671_v0  ;;  %v725_v36 = vpop.f32.mrb[9].mxu1 }
 0x25e   : > { %v726_v37 = vadd.f32 %v1671_v0, %v725_v36  ;;  %v1095_v38 = vpop.f32.mrb[10].mxu1 }
 0x25f   : > { %vm767_vm8 = vcmp.gt.f32.partialorder %v734_v35, 0.0  ;;  %v784_v39 = vmul.f32 %v1673_v2, %v734_v35  ;;  %v737_v40 = vadd.f32 %v1095_v38, %v1671_v0  ;;  %v728_v41 = vpop.f32.mrb[11].mxu1 }
 0x260   : > { %vm765_vm9 = vcmp.gt.f32.partialorder %v726_v37, 0.0  ;;  %v782_v42 = vmul.f32 %v1673_v2, %v726_v37  ;;  %v729_v43 = vadd.f32 %v1671_v0, %v728_v41 }
 0x261   : > { %v800_v44 = vsel %vm767_vm8, %v734_v35, %v784_v39  ;;  %vm768_vm10 = vcmp.gt.f32.partialorder %v737_v40, 0.0  ;;  %v785_v45 = vmul.f32 %v1673_v2, %v737_v40 }
 0x262   : > { %816 = vst [vmem:[%s1684_s6 + $0x50] sm:$0xff] %v800_v44  ;;  %v798_v46 = vsel %vm765_vm9, %v726_v37, %v782_v42  ;;  %vm766_vm11 = vcmp.gt.f32.partialorder %v729_v43, 0.0  ;;  %v783_v47 = vmul.f32 %v1673_v2, %v729_v43 }
 0x263   : > { %814 = vst [vmem:[%s1684_s6 + $0x40] sm:$0xff] %v798_v46  ;;  %v801_v48 = vsel %vm768_vm10, %v737_v40, %v785_v45 }
 0x264   : > { %817 = vst [vmem:[%s1684_s6 + $0x58] sm:$0xff] %v801_v48  ;;  %v799_v49 = vsel %vm766_vm11, %v729_v43, %v783_v47  ;;  %v1098_v50 = vpop.f32.mrb[12].mxu1 }
 0x265   : > { %815 = vst [vmem:[%s1684_s6 + $0x48] sm:$0xff] %v799_v49  ;;  %v750_v51 = vadd.f32 %v1098_v50, %v1671_v0  ;;  %v741_v52 = vpop.f32.mrb[13].mxu1 }
 0x266   : > { %v742_v53 = vadd.f32 %v1671_v0, %v741_v52  ;;  %v1099_v54 = vpop.f32.mrb[14].mxu1 }
 0x267   : > { %vm771_vm12 = vcmp.gt.f32.partialorder %v750_v51, 0.0  ;;  %v788_v55 = vmul.f32 %v1673_v2, %v750_v51  ;;  %v753_v56 = vadd.f32 %v1099_v54, %v1671_v0  ;;  %v744_v57 = vpop.f32.mrb[15].mxu1 }
 0x268   : > { %vm769_vm13 = vcmp.gt.f32.partialorder %v742_v53, 0.0  ;;  %v786_v58 = vmul.f32 %v1673_v2, %v742_v53  ;;  %v745_v59 = vadd.f32 %v1671_v0, %v744_v57 }
 0x269   : > { %v804_v60 = vsel %vm771_vm12, %v750_v51, %v788_v55  ;;  %vm772_vm14 = vcmp.gt.f32.partialorder %v753_v56, 0.0  ;;  %v789_v61 = vmul.f32 %v1673_v2, %v753_v56 }
 0x26a   : > { %820 = vst [vmem:[%s1684_s6 + $0x70] sm:$0xff] %v804_v60  ;;  %v802_v62 = vsel %vm769_vm13, %v742_v53, %v786_v58  ;;  %vm770_vm15 = vcmp.gt.f32.partialorder %v745_v59, 0.0  ;;  %v787_v63 = vmul.f32 %v1673_v2, %v745_v59 }
 0x26b   : > { %818 = vst [vmem:[%s1684_s6 + $0x60] sm:$0xff] %v802_v62  ;;  %v805_v0 = vsel %vm772_vm14, %v753_v56, %v789_v61 }
 0x26c   : > { %821 = vst [vmem:[%s1684_s6 + $0x78] sm:$0xff] %v805_v0  ;;  %v803_v1 = vsel %vm770_vm15, %v745_v59, %v787_v63 }
 0x26d   : > { %819 = vst [vmem:[%s1684_s6 + $0x68] sm:$0xff] %v803_v1 }
 0x26e   : > { %1301 = shalt.err (!%p1298_p8)
}
 0x26f   : > { %s1302_s16 = scalar_lea.hbm %s1729_s17, 2048  ;;  %s1306_s29 = scalar_lea.hbm %s1788_s5, 4096 }
 0x270   : > { %p1303_p11 = scmp.ne.s32.totalorder %s1729_s17, %s1302_s16  ;;  %p1307_p6 = scmp.lt.u32.totalorder %s1729_s17, %s1788_s5 }
 0x271   : > { %p1308_p13 = scmp.lt.u32.totalorder %s1306_s29, %s1302_s16  ;;  %p1310_p5 = scmp.lt.u32.totalorder %s1302_s16, %s1729_s17 }
 0x272   : > { %p1304_p12 = pnand %p1303_p11, %p1518_p10 }
 0x273   : > { %p1309_p0 = por %p1308_p13, %p1307_p6 }
 0x274   : > { %p1305_p3 = pneg %p1304_p12 }
 0x275   : > { %p1311_p9 = por %p1310_p5, %p1309_p0 }
 0x277   : > { %p1312_p1 = pnand %p1311_p9, %p1305_p3 }
 0x279   : > { %1315 = shalt.err (!%p1312_p1)
}
 0x27a   : > { %s1388_s0 = smov 128   ;;  %s1389_s27 = smov 8  }
 0x27b   : > { %1108 = dma.vmem_to_hbm [thread:$0]  (%p1518_p10), %s1731_s13, 2048, %s1729_s17, %s823_s9, %s1388_s0, %s1388_s0, %s1389_s27  }
 0x27c PF: > { %s853_s15 = sand.u32 1, %s1358_s20   ;;  %p1816_p2 = scmp.ne.s32.totalorder %s1798_s28, 0 }
 0x27d   : > { %p1817_p7 = scmp.ge.s32.totalorder %s1378_s25, 2  ;;  %s854_s6 = scalar_lea.sflag [#allocation7], %s853_s15 }
 0x27f   : > { %p1122_p4 = pnand %p1817_p7, %p1816_p2 }
 0x281   : > { %1353 = dma.done.wait (!%p1122_p4), %s854_s6, 2048  }
 0x282   : > { %1355 = vsyncadd (!%p1122_p4), %s854_s6, 4294965248  ;;  %s25_s25 = sadd.s32 1, %s1378_s25   ;;  %s1818_s14 = sld [smem:[#allocation17_spill]] }
 0x283   : > { %p22_p8 = scmp.ge.s32.totalorder %s25_s25, 4   ;;  %s1819_s7 = sld [smem:[#allocation16_spill]] }
 0x284   : > { %s1820_s20 = smov %s1362_s21  ;;  %s1821_s21 = smov %s1366_s22 }
 0x285   : > { %s1823_s23 = smov %s1374_s24  ;;  %24 = sbr.rel (!%p22_p8) target bundleno = 12 (0xc), region = 107 }
 0x288   : > { %s1822_s22 = smov %s1818_s14 }
 0x289   : > { %s1824_s24 = smov %s1819_s7 }
 0x28c   :  { %859 = vsyncpa [#allocation6], 1 }
 0x28d   :  { %861 = vsyncpa [#allocation6 + $0x1], 1 }
 0x28e   :  { %862 = vsyncpa [#allocation9], 1 }
 0x28f   :  { %864 = vsyncpa [#allocation9 + $0x1], 1 }
 0x290   :  { %865 = vsyncpa [#allocation7], 1 }
 0x291   :  { %867 = vsyncpa [#allocation7 + $0x1], 1 }

</bundles_post_ra>
